<compile_context>
chip_gen: v5e
topology: v5e:2x2
jax: 0.10.0
libtpu: 0.0.40
codegen_flags: <defaults>
</compile_context>

<pallas_src>
import functools

import jax
import jax.numpy as jnp
from jax import lax
from jax.experimental import pallas as pl
from jax.experimental.pallas import tpu as pltpu


def _round_up(x, m):
    return (x + m - 1) // m * m


def _mlp_classifier_kernel(x_ref, w_ref, b_ref, o_ref, acc_ref, *, compute_dtype):
    """One (tm, tn) output tile; reduction over K is the last grid axis."""
    k = pl.program_id(2)

    @pl.when(k == 0)
    def _():
        # Fold the bias into the accumulator init (saves an add at finalize).
        acc_ref[...] = jnp.broadcast_to(
            b_ref[...].astype(jnp.float32), acc_ref.shape
        )

    x = x_ref[...]
    w = w_ref[...]
    if compute_dtype is not None:
        x = x.astype(compute_dtype)
        w = w.astype(compute_dtype)

    # x: (tm, tk), w: (tn, tk)  ->  contract over K on the MXU (f32 accumulate).
    acc_ref[...] += lax.dot_general(
        x,
        w,
        dimension_numbers=(((1,), (1,)), ((), ())),
        preferred_element_type=jnp.float32,
    )

    @pl.when(k == pl.num_programs(2) - 1)
    def _():
        o_ref[...] = acc_ref[...].astype(o_ref.dtype)


def _pick_tiles(B, K, N_pad):
    # Batch tile: prefer large 128-aligned tiles; tiny batches use a full block.
    if B >= 256:
        tm = 256
    elif B >= 128:
        tm = 128
    else:
        tm = _round_up(B, 8)
    B_pad = _round_up(B, tm)

    # Output tile: lane-dense multiple of 128 (N_pad already is one).
    tn = 128
    for cand in (512, 256, 128):
        if N_pad % cand == 0:
            tn = cand
            break

    # K tile: 128-aligned if K allows, otherwise the full (legal) dimension.
    tk = K
    for cand in (512, 256, 128):
        if K % cand == 0:
            tk = cand
            break

    return tm, B_pad, tn, tk


def mlp_classifier_forward(x, weight, bias, *, compute_dtype=None):
    """y = dropout(x, p=0) @ weight.T + bias   (dropout is identity).

    x:      (B, input_dim)  float32
    weight: (output_dim, input_dim)  -- PyTorch nn.Linear layout (NOT transposed)
    bias:   (output_dim,)
    compute_dtype: optional dtype (e.g. jnp.bfloat16) for the MXU operands;
                   accumulation stays float32.
    returns (B, output_dim) in x.dtype
    """
    B, K = x.shape
    N, K2 = weight.shape
    assert K == K2, "input_dim mismatch"
    assert bias.shape == (N,)

    out_dtype = x.dtype

    # Lane-dense output: pad N up to a multiple of 128.
    N_pad = _round_up(N, 128)
    tm, B_pad, tn, tk = _pick_tiles(B, K, N_pad)

    if B_pad != B:
        x = jnp.pad(x, ((0, B_pad - B), (0, 0)))
    if N_pad != N:
        weight = jnp.pad(weight, ((0, N_pad - N), (0, 0)))
        bias = jnp.pad(bias, ((0, N_pad - N),))
    b2 = bias.reshape(1, N_pad).astype(jnp.float32)

    grid = (B_pad // tm, N_pad // tn, K // tk)

    # Explicit VMEM budget: double-buffered inputs + output + f32 scratch,
    # with headroom; capped well under v7x's 64 MiB physical VMEM.
    in_itemsize = jnp.dtype(x.dtype).itemsize
    out_itemsize = jnp.dtype(out_dtype).itemsize
    tile_bytes = (
        2 * (tm * tk + tn * tk + tn) * in_itemsize  # x, w, bias (double-buffered)
        + 2 * tm * tn * out_itemsize                # output (double-buffered)
        + tm * tn * 4                               # f32 accumulator scratch
    )
    vmem_limit = int(min(max(2 * tile_bytes, 32 * 1024 * 1024), 48 * 1024 * 1024))

    cost = pl.CostEstimate(
        flops=2 * B_pad * N_pad * K,
        transcendentals=0,
        bytes_accessed=(B_pad * K + N_pad * K + N_pad) * in_itemsize
        + B_pad * N_pad * out_itemsize,
    )

    kernel = functools.partial(_mlp_classifier_kernel, compute_dtype=compute_dtype)

    out = pl.pallas_call(
        kernel,
        out_shape=jax.ShapeDtypeStruct((B_pad, N_pad), out_dtype),
        grid_spec=pltpu.PrefetchScalarGridSpec(
            num_scalar_prefetch=0,
            grid=grid,
            in_specs=[
                # x tile: rows follow grid axis 0, K-chunk follows grid axis 2.
                pl.BlockSpec((tm, tk), lambda i, j, k: (i, k)),
                # weight tile (PyTorch layout): N-chunk x K-chunk.
                pl.BlockSpec((tn, tk), lambda i, j, k: (j, k)),
                # bias: N-chunk, same for every i/k.
                pl.BlockSpec((1, tn), lambda i, j, k: (0, j)),
            ],
            out_specs=pl.BlockSpec((tm, tn), lambda i, j, k: (i, j)),
            scratch_shapes=[pltpu.VMEM((tm, tn), jnp.float32)],
        ),
        compiler_params=pltpu.CompilerParams(
            dimension_semantics=("parallel", "parallel", "arbitrary"),
            vmem_limit_bytes=vmem_limit,
        ),
        cost_estimate=cost,
    )(x, weight, b2)

    return out[:B, :N]


def init_mlp_classifier_params(key, input_dim, output_dim):
    """Deterministic init matching nn.Linear's default (Kaiming-uniform-ish)."""
    kw, kb = jax.random.split(key)
    bound = 1.0 / (input_dim ** 0.5)
    weight = jax.random.uniform(
        kw, (output_dim, input_dim), jnp.float32, minval=-bound, maxval=bound
    )
    bias = jax.random.uniform(
        kb, (output_dim,), jnp.float32, minval=-bound, maxval=bound
    )
    return weight, bias


if __name__ == "__main__":
    key = jax.random.PRNGKey(0)
    kx, kp = jax.random.split(key)

    batch, input_dim, output_dim = 8, 32, 16

    x = jax.random.normal(kx, (batch, input_dim), jnp.float32)
    weight, bias = init_mlp_classifier_params(kp, input_dim, output_dim)

    # Reference (dropout p=0 -> identity).
    y_ref = x @ weight.T + bias

    # f32 path: bit-comparable to the PyTorch reference.
    fwd = jax.jit(mlp_classifier_forward)
    y = jax.block_until_ready(fwd(x, weight, bias))
    assert y.shape == (batch, output_dim)
    assert jnp.allclose(y, y_ref, atol=1e-5, rtol=1e-5), "f32 mismatch vs reference"

    # bf16-operand path (MXU fast path on v5e/v6e/v7x), f32 accumulation.
    fwd_bf16 = jax.jit(
        functools.partial(mlp_classifier_forward, compute_dtype=jnp.bfloat16)
    )
    y16 = jax.block_until_ready(fwd_bf16(x, weight, bias))
    assert y16.shape == (batch, output_dim)
    assert jnp.allclose(y16, y_ref, atol=5e-2, rtol=5e-2), "bf16 mismatch vs reference"

    print("KERNEL_OK")
</pallas_src>

<mosaic_0001>
module attributes {stable_mosaic.version = 11 : i64} {
  func.func @_mlp_classifier_kernel(%arg0: i32, %arg1: i32, %arg2: i32, %arg3: memref<8x32xf32, #tpu.memory_space<vmem>>, %arg4: memref<128x32xf32, #tpu.memory_space<vmem>>, %arg5: memref<1x128xf32, #tpu.memory_space<vmem>>, %arg6: memref<8x128xf32, #tpu.memory_space<vmem>>, %arg7: memref<8x128xf32, #tpu.memory_space<vmem>>) attributes {dimension_semantics = [#tpu.dimension_semantics<parallel>, #tpu.dimension_semantics<parallel>, #tpu.dimension_semantics<arbitrary>], iteration_bounds = array<i64: 1, 1, 1>, scalar_prefetch = 0 : i64, scratch_operands = 1 : i64, tpu.core_type = #tpu.core_type<tc>, window_params = [{transform_indices = @transform_0, window_bounds = array<i64: 8, 32>}, {transform_indices = @transform_1, window_bounds = array<i64: 128, 32>}, {transform_indices = @transform_2, window_bounds = array<i64: 1, 128>}, {transform_indices = @transform_3, window_bounds = array<i64: 8, 128>}]} {
    %c0_i32 = arith.constant 0 : i32
    %0 = arith.cmpi eq, %arg2, %c0_i32 : i32
    %1 = arith.extui %0 : i1 to i32
    %c0_i32_0 = arith.constant 0 : i32
    %2 = arith.cmpi ne, %1, %c0_i32_0 : i32
    scf.if %2 {
      %c0_10 = arith.constant 0 : index
      %c0_11 = arith.constant 0 : index
      %12 = vector.load %arg5[%c0_10, %c0_11] : memref<1x128xf32, #tpu.memory_space<vmem>>, vector<1x128xf32>
      %13 = vector.shape_cast %12 : vector<1x128xf32> to vector<1x128xf32>
      %14 = vector.broadcast %13 : vector<1x128xf32> to vector<8x128xf32>
      %c0_12 = arith.constant 0 : index
      %c0_13 = arith.constant 0 : index
      %15 = vector.load %arg7[%c0_12, %c0_13] : memref<8x128xf32, #tpu.memory_space<vmem>>, vector<8x128xf32>
      tpu.vector_store %arg7[%c0_12, %c0_13], %14 {strides = array<i32>} : memref<8x128xf32, #tpu.memory_space<vmem>>, vector<8x128xf32>,
    } else {
    }
    %c0 = arith.constant 0 : index
    %c0_1 = arith.constant 0 : index
    %3 = vector.load %arg3[%c0, %c0_1] : memref<8x32xf32, #tpu.memory_space<vmem>>, vector<8x32xf32>
    %c0_2 = arith.constant 0 : index
    %c0_3 = arith.constant 0 : index
    %4 = vector.load %arg4[%c0_2, %c0_3] : memref<128x32xf32, #tpu.memory_space<vmem>>, vector<128x32xf32>
    %c0_4 = arith.constant 0 : index
    %c0_5 = arith.constant 0 : index
    %5 = vector.load %arg7[%c0_4, %c0_5] : memref<8x128xf32, #tpu.memory_space<vmem>>, vector<8x128xf32>
    %cst = arith.constant dense<0.000000e+00> : vector<8x128xf32>
    %6 = tpu.matmul %3, %4, %cst {dimension_numbers = #tpu.dot_dimension_numbers<[1], [1], [0], [0], [0, 0, 1, 0], [], []>} : vector<8x32xf32>, vector<128x32xf32>, vector<8x128xf32> -> vector<8x128xf32>
    %7 = arith.addf %5, %6 : vector<8x128xf32>
    %c0_6 = arith.constant 0 : index
    %c0_7 = arith.constant 0 : index
    %8 = vector.load %arg7[%c0_6, %c0_7] : memref<8x128xf32, #tpu.memory_space<vmem>>, vector<8x128xf32>
    tpu.vector_store %arg7[%c0_6, %c0_7], %7 {strides = array<i32>} : memref<8x128xf32, #tpu.memory_space<vmem>>, vector<8x128xf32>,
    %c0_i32_8 = arith.constant 0 : i32
    %9 = arith.cmpi eq, %arg2, %c0_i32_8 : i32
    %10 = arith.extui %9 : i1 to i32
    %c0_i32_9 = arith.constant 0 : i32
    %11 = arith.cmpi ne, %10, %c0_i32_9 : i32
    scf.if %11 {
      %c0_10 = arith.constant 0 : index
      %c0_11 = arith.constant 0 : index
      %12 = vector.load %arg7[%c0_10, %c0_11] : memref<8x128xf32, #tpu.memory_space<vmem>>, vector<8x128xf32>
      %c0_12 = arith.constant 0 : index
      %c0_13 = arith.constant 0 : index
      %13 = vector.load %arg6[%c0_12, %c0_13] : memref<8x128xf32, #tpu.memory_space<vmem>>, vector<8x128xf32>
      tpu.vector_store %arg6[%c0_12, %c0_13], %12 {strides = array<i32>} : memref<8x128xf32, #tpu.memory_space<vmem>>, vector<8x128xf32>,
    } else {
    }
    return
  }
  func.func @transform_0(%arg0: i32, %arg1: i32, %arg2: i32) -> (i32, i32) {
    %c0_i32 = arith.constant 0 : i32
    return %arg0, %arg2 : i32, i32
  }
  func.func @transform_1(%arg0: i32, %arg1: i32, %arg2: i32) -> (i32, i32) {
    %c0_i32 = arith.constant 0 : i32
    return %arg1, %arg2 : i32, i32
  }
  func.func @transform_2(%arg0: i32, %arg1: i32, %arg2: i32) -> (i32, i32) {
    %c0_i32 = arith.constant 0 : i32
    %c0_i32_0 = arith.constant 0 : i32
    return %c0_i32, %arg1 : i32, i32
  }
  func.func @transform_3(%arg0: i32, %arg1: i32, %arg2: i32) -> (i32, i32) {
    %c0_i32 = arith.constant 0 : i32
    return %arg0, %arg1 : i32, i32
  }
}

</mosaic_0001>

<bundles_post_ra>
// kernel: mlp_classifier_forward.1
= control target key start
LH: loop header
LB: loop body
LE: loop exit
PB: predicated region body
PF: predicated region fallthrough
CT: control target
= control target key end

     0   :  { %vm42_vm0 = vcmask 261120   ;;  %s277_s0 = inlined_call_operand.vmem [shape: f32[8,32], index: 0, kind: input, shape index: {}]   ;;  %s278_s1 = inlined_call_operand.vmem [shape: f32[128,32], index: 1, kind: input, shape index: {}]   ;;  %s279_s2 = inlined_call_operand.vmem [shape: f32[1,128], index: 2, kind: input, shape index: {}]   ;;  %s280_s3 = inlined_call_operand.hbm [shape: f32[8,128], index: 3, kind: output, shape index: {}]  }
   0x1   :  { %v40_v0 = vld [vmem:[%s278_s1 + $0x78] sm:$0xff]  ;;  %v39_v1 = vld [vmem:[%s278_s1 + $0x70] sm:$0xff] }
   0x2   :  { %137 = vmatpush.xpose.msk.msra.mxu0 %vm42_vm0, %v40_v0 }
   0x3   :  { %8 = vsyncpa [#allocation4], 0  ;;  %v38_v2 = vld [vmem:[%s278_s1 + $0x68] sm:$0xff]  ;;  %v37_v3 = vld [vmem:[%s278_s1 + $0x60] sm:$0xff]  ;;  %s182_s21 = smov [#allocation3]   ;;  %s128_s25 = sshll.u32 %s280_s3, 4  ;;  %s129_s25 = int_to_ptr.hbm [resolvable:$true] %s128_s25 }
   0x4   :  { %v36_v4 = vld [vmem:[%s278_s1 + $0x58] sm:$0xff]  ;;  %v35_v5 = vld [vmem:[%s278_s1 + $0x50] sm:$0xff]  ;;  %v34_v6 = vld [vmem:[%s278_s1 + $0x48] sm:$0xff]  ;;  %s126_s22 = sshll.u32 %s182_s21, 4  ;;  %s127_s22 = int_to_ptr.vmem [resolvable:$true] %s126_s22 }
   0x5   :  { %v33_v7 = vld [vmem:[%s278_s1 + $0x40] sm:$0xff]  ;;  %v32_v8 = vld [vmem:[%s278_s1 + $0x38] sm:$0xff]  ;;  %v31_v9 = vld [vmem:[%s278_s1 + $0x30] sm:$0xff] }
   0x6   :  { %138 = vmatpush.xpose.msk.msra.mxu0 %vm42_vm0, %v39_v1  ;;  %v30_v10 = vld [vmem:[%s278_s1 + $0x28] sm:$0xff]  ;;  %v29_v11 = vld [vmem:[%s278_s1 + $0x20] sm:$0xff]  ;;  %v28_v12 = vld [vmem:[%s278_s1 + $0x18] sm:$0xff] }
   0x7   :  { %v27_v13 = vld [vmem:[%s278_s1 + $0x10] sm:$0xff]  ;;  %v26_v14 = vld [vmem:[%s278_s1 + $0x8] sm:$0xff]  ;;  %v25_v15 = vld [vmem:[%s278_s1] sm:$0xff] }
   0x8   :  { %v24_v16 = vld [vmem:[%s277_s0] sm:$0xff] }
   0x9   :  { %v155_v17 = vld [vmem:[%s279_s2] ss:$0 sm:$0xff] }
   0xa   :  { %139 = vmatpush.xpose.msk.msra.mxu0 %vm42_vm0, %v38_v2 }
   0xe   :  { %140 = vmatpush.xpose.msk.msra.mxu0 %vm42_vm0, %v37_v3 }
  0x12   :  { %141 = vmatpush.xpose.msk.msra.mxu0 %vm42_vm0, %v36_v4 }
  0x16   :  { %142 = vmatpush.xpose.msk.msra.mxu0 %vm42_vm0, %v35_v5 }
  0x1a   :  { %143 = vmatpush.xpose.msk.msra.mxu0 %vm42_vm0, %v34_v6 }
  0x1e   :  { %144 = vmatpush.xpose.msk.msra.mxu0 %vm42_vm0, %v33_v7 }
  0x22   :  { %145 = vmatpush.xpose.msk.msra.mxu0 %vm42_vm0, %v32_v8 }
  0x26   :  { %146 = vmatpush.xpose.msk.msra.mxu0 %vm42_vm0, %v31_v9 }
  0x2a   :  { %147 = vmatpush.xpose.msk.msra.mxu0 %vm42_vm0, %v30_v10 }
  0x2e   :  { %148 = vmatpush.xpose.msk.msra.mxu0 %vm42_vm0, %v29_v11 }
  0x32   :  { %149 = vmatpush.xpose.msk.msra.mxu0 %vm42_vm0, %v28_v12 }
  0x36   :  { %150 = vmatpush.xpose.msk.msra.mxu0 %vm42_vm0, %v27_v13 }
  0x3a   :  { %151 = vmatpush.xpose.msk.msra.mxu0 %vm42_vm0, %v26_v14 }
  0x3e   :  { %152 = vmatpush.xpose.msk.msra.mxu0 %vm42_vm0, %v25_v15 }
  0x41   :  { %153 = vmatmul.msk.f32.vlgmr.msra.gmra.mxu0 %vm42_vm0, %v24_v16 }
  0xbe   :  { %v111_v18 = vpop.f32.mrf.mxu0 }
  0xbf   :  { %v114_v19 = vadd.f32 %v155_v17, %v111_v18 }
  0xc1   :  { %120 = vst [vmem:[#allocation3] sm:$0xff] %v114_v19 }
  0xc2   :  { %131 = dma.vmem_to_hbm [thread:$0]  %s127_s22, 128, %s129_s25, [#allocation4]  }
  0xc3   :  { %180 = dma.done.wait [#allocation4], 128  }
  0xc4   :  { %181 = vsyncadd [#allocation4], 4294967168 }
  0xc5   :  { %136 = vsyncpa [#allocation4], 1 }

</bundles_post_ra>
